<compile_context>
chip_gen: v6e
topology: v6e:2x2x1
jax: 0.10.0
libtpu: 0.0.40
codegen_flags: <defaults>
</compile_context>

<pallas_src>
import functools

import jax
import jax.numpy as jnp
from jax.experimental import pallas as pl
from jax.experimental.pallas import tpu as pltpu


def _round_up(n, m):
    return ((n + m - 1) // m) * m


def _cdiv(a, b):
    return (a + b - 1) // b


def critic_kernel(xu_ref, w1t_ref, b1c_ref, w2t_ref, b2c_ref, w3r_ref, b3_ref,
                  o_ref):
    # Transposed orientation: batch rides the lane axis.
    xu = xu_ref[...].astype(jnp.bfloat16)                       # [Kp, TM]

    # fc1 + ReLU:  h1 = relu(W1^T @ xu + b1)        -> [Hp, TM]  f32
    h1 = jnp.dot(w1t_ref[...], xu,
                 preferred_element_type=jnp.float32) + b1c_ref[...]
    h1 = jnp.maximum(h1, 0.0)

    # fc2 + ReLU:  h2 = relu(W2^T @ h1 + b2)        -> [Hp, TM]  f32
    h2 = jnp.dot(w2t_ref[...], h1.astype(jnp.bfloat16),
                 preferred_element_type=jnp.float32) + b2c_ref[...]
    h2 = jnp.maximum(h2, 0.0)

    # fc3:  q = w3^T @ h2 + b3                      -> [1, TM]   lane-major
    q = jnp.dot(w3r_ref[...], h2.astype(jnp.bfloat16),
                preferred_element_type=jnp.float32) + b3_ref[...]

    o_ref[...] = q[None].astype(o_ref.dtype)                    # [1, 1, TM]


def init_critic_params(key, state_dim, action_dim, hidden_dim=64):
    """nn.Linear-style U(-1/sqrt(fan_in), 1/sqrt(fan_in)) init.
    Logical layout: weights [in, out] (transposed vs PyTorch), biases [1, out]."""
    def linear(k, fan_in, fan_out):
        kw, kb = jax.random.split(k)
        bound = 1.0 / jnp.sqrt(fan_in)
        w = jax.random.uniform(kw, (fan_in, fan_out), jnp.float32, -bound, bound)
        b = jax.random.uniform(kb, (1, fan_out), jnp.float32, -bound, bound)
        return w, b

    k1, k2, k3 = jax.random.split(key, 3)
    w1, b1 = linear(k1, state_dim + action_dim, hidden_dim)
    w2, b2 = linear(k2, hidden_dim, hidden_dim)
    w3, b3 = linear(k3, hidden_dim, 1)
    return (w1, b1, w2, b2, w3, b3)


def pack_critic_params(params, lane=128):
    """One-time packing for the transposed kernel:
       * transpose weights to [out, in] (matmul LHS), biases to columns [Hp, 1],
       * zero-pad hidden to a multiple of 128 lanes and K to a multiple of 8,
       * cast matmul weights to bf16.
    Zero padding + ReLU keeps padded rows/cols at exact zero -> results unchanged."""
    w1, b1, w2, b2, w3, b3 = params
    k_in, hidden = w1.shape
    kp = _round_up(k_in, 8)
    hp = _round_up(hidden, lane)
    pk, ph = kp - k_in, hp - hidden

    w1t = jnp.pad(w1, ((0, pk), (0, ph))).T.astype(jnp.bfloat16)   # [Hp, Kp]
    b1c = jnp.pad(b1, ((0, 0), (0, ph))).T.astype(jnp.float32)     # [Hp, 1]
    w2t = jnp.pad(w2, ((0, ph), (0, ph))).T.astype(jnp.bfloat16)   # [Hp, Hp]
    b2c = jnp.pad(b2, ((0, 0), (0, ph))).T.astype(jnp.float32)     # [Hp, 1]
    w3r = jnp.pad(w3, ((0, ph), (0, 0))).T.astype(jnp.bfloat16)    # [1, Hp]
    b3p = b3.astype(jnp.float32)                                   # [1, 1]
    return (w1t, b1c, w2t, b2c, w3r, b3p)


@functools.partial(jax.jit, static_argnames=("block_rows",))
def critic_forward(x, u, packed_params, block_rows=2048):
    """x: [B, state_dim], u: [B, action_dim]  ->  q: [B, 1] (f32)."""
    w1t, b1c, w2t, b2c, w3r, b3 = packed_params
    batch = x.shape[0]
    k = x.shape[1] + u.shape[1]
    hp, kp = w1t.shape[0], w1t.shape[1]
    lane = 128

    # Fused concat (wrapper-side, HBM is not the bound) + transpose so the batch
    # rides the lane axis, + zero-pad the feature dim to the packed K.
    xu_t = jnp.concatenate([x, u], axis=1).T                       # [K, B]
    if kp != k:
        xu_t = jnp.pad(xu_t, ((0, kp - k), (0, 0)))

    # Balanced, lane-aligned batch tiles.  Force >=2 grid steps when the batch
    # allows so ("parallel",) can shard across both v7x TensorCores; cap each
    # tile at block_rows (2048) so VMEM stays comfortable on every generation.
    nb = _cdiv(batch, block_rows)
    if batch >= 2 * lane:
        nb = max(nb, 2)
    tm = _round_up(_cdiv(batch, nb), lane)
    bp = nb * tm
    if bp != batch:
        xu_t = jnp.pad(xu_t, ((0, 0), (0, bp - batch)))

    weight_bytes = sum(int(a.size) * a.dtype.itemsize
                       for a in (w1t, b1c, w2t, b2c, w3r, b3))
    cost = pl.CostEstimate(
        flops=2 * bp * (kp * hp + hp * hp + hp),
        transcendentals=0,
        bytes_accessed=bp * kp * 4 + bp * 4 + weight_bytes,
    )

    const2d = lambda i: (0, 0)
    out = pl.pallas_call(
        critic_kernel,
        out_shape=jax.ShapeDtypeStruct((nb, 1, tm), jnp.float32),
        grid=(nb,),
        in_specs=[
            pl.BlockSpec((kp, tm), lambda i: (0, i)),   # activations: streamed
            pl.BlockSpec(w1t.shape, const2d),           # weights/biases: resident
            pl.BlockSpec(b1c.shape, const2d),
            pl.BlockSpec(w2t.shape, const2d),
            pl.BlockSpec(b2c.shape, const2d),
            pl.BlockSpec(w3r.shape, const2d),
            pl.BlockSpec(b3.shape, const2d),
        ],
        out_specs=pl.BlockSpec((1, 1, tm), lambda i: (i, 0, 0)),   # lane-dense row
        compiler_params=pltpu.CompilerParams(
            dimension_semantics=("parallel",),          # v7x: 2 TensorCores
            vmem_limit_bytes=32 * 1024 * 1024),
        cost_estimate=cost,
    )(xu_t, w1t, b1c, w2t, b2c, w3r, b3)

    # (nb, 1, tm) -> flat padded batch -> [B, 1]; pure row-major reshapes.
    return out.reshape(-1)[:batch].reshape(batch, 1)


def critic_reference_f32(x, u, params):
    """Pure-JAX f32 reference matching the PyTorch forward pass."""
    w1, b1, w2, b2, w3, b3 = params
    h = jnp.concatenate([x, u], axis=1)
    h = jnp.maximum(h @ w1 + b1, 0.0)
    h = jnp.maximum(h @ w2 + b2, 0.0)
    return h @ w3 + b3


def critic_reference_bf16(x, u, params):
    """Reference with the same bf16-operand / f32-accumulate numerics as the kernel."""
    w1, b1, w2, b2, w3, b3 = params
    bf = jnp.bfloat16
    h = jnp.concatenate([x, u], axis=1).astype(bf)
    h = jnp.maximum(jnp.dot(h, w1.astype(bf), preferred_element_type=jnp.float32) + b1, 0.0)
    h = jnp.maximum(jnp.dot(h.astype(bf), w2.astype(bf), preferred_element_type=jnp.float32) + b2, 0.0)
    return jnp.dot(h.astype(bf), w3.astype(bf), preferred_element_type=jnp.float32) + b3


if __name__ == "__main__":
    batch, state_dim, action_dim, hidden_dim = 8, 12, 4, 64

    key = jax.random.PRNGKey(0)
    kx, ku, kp = jax.random.split(key, 3)

    x = jax.random.normal(kx, (batch, state_dim), jnp.float32)
    u = jax.random.normal(ku, (batch, action_dim), jnp.float32)
    params = init_critic_params(kp, state_dim, action_dim, hidden_dim)
    packed = pack_critic_params(params)

    q = critic_forward(x, u, packed)
    q = jax.block_until_ready(q)
    assert q.shape == (batch, 1)

    # Tight check vs. a reference with matching bf16/f32 numerics.
    q_bf = critic_reference_bf16(x, u, params)
    assert jnp.allclose(q, q_bf, atol=1e-3, rtol=1e-3), "mismatch vs bf16 reference"

    # Sanity check vs. the full-f32 PyTorch-equivalent forward (bf16 MXU operands
    # with f32 accumulation -> loose tolerance).
    q_f32 = critic_reference_f32(x, u, params)
    assert jnp.allclose(q, q_f32, atol=3e-2, rtol=3e-2), "mismatch vs f32 reference"

    print("KERNEL_OK")
</pallas_src>

<mosaic_0001>
module attributes {stable_mosaic.version = 11 : i64} {
  func.func @critic_kernel(%arg0: i32, %arg1: memref<16x128xf32, #tpu.memory_space<vmem>>, %arg2: memref<128x16xbf16, #tpu.memory_space<vmem>>, %arg3: memref<128x1xf32, #tpu.memory_space<vmem>>, %arg4: memref<128x128xbf16, #tpu.memory_space<vmem>>, %arg5: memref<128x1xf32, #tpu.memory_space<vmem>>, %arg6: memref<1x128xbf16, #tpu.memory_space<vmem>>, %arg7: memref<1x1xf32, #tpu.memory_space<vmem>>, %arg8: memref<1x1x128xf32, #tpu.memory_space<vmem>>) attributes {dimension_semantics = [#tpu.dimension_semantics<parallel>], iteration_bounds = array<i64: 1>, scalar_prefetch = 0 : i64, scratch_operands = 0 : i64, tpu.core_type = #tpu.core_type<tc>, window_params = [{transform_indices = @transform_0, window_bounds = array<i64: 16, 128>}, {pipeline_mode = #tpu.pipeline_mode<synchronous>, transform_indices = @transform_1, window_bounds = array<i64: 128, 16>}, {pipeline_mode = #tpu.pipeline_mode<synchronous>, transform_indices = @transform_2, window_bounds = array<i64: 128, 1>}, {pipeline_mode = #tpu.pipeline_mode<synchronous>, transform_indices = @transform_3, window_bounds = array<i64: 128, 128>}, {pipeline_mode = #tpu.pipeline_mode<synchronous>, transform_indices = @transform_4, window_bounds = array<i64: 128, 1>}, {pipeline_mode = #tpu.pipeline_mode<synchronous>, transform_indices = @transform_5, window_bounds = array<i64: 1, 128>}, {pipeline_mode = #tpu.pipeline_mode<synchronous>, transform_indices = @transform_6, window_bounds = array<i64: 1, 1>}, {transform_indices = @transform_7, window_bounds = array<i64: 1, 1, 128>}]} {
    %c0 = arith.constant 0 : index
    %c0_0 = arith.constant 0 : index
    %0 = vector.load %arg1[%c0, %c0_0] : memref<16x128xf32, #tpu.memory_space<vmem>>, vector<16x128xf32>
    %1 = arith.truncf %0 : vector<16x128xf32> to vector<16x128xbf16>
    %c0_1 = arith.constant 0 : index
    %c0_2 = arith.constant 0 : index
    %2 = vector.load %arg2[%c0_1, %c0_2] : memref<128x16xbf16, #tpu.memory_space<vmem>>, vector<128x16xbf16>
    %cst = arith.constant dense<0.000000e+00> : vector<128x128xf32>
    %3 = tpu.matmul %2, %1, %cst {dimension_numbers = #tpu.dot_dimension_numbers<[1], [0], [0], [1], [0, 0, 1, 1], [], []>} : vector<128x16xbf16>, vector<16x128xbf16>, vector<128x128xf32> -> vector<128x128xf32>
    %c0_3 = arith.constant 0 : index
    %c0_4 = arith.constant 0 : index
    %4 = vector.load %arg3[%c0_3, %c0_4] : memref<128x1xf32, #tpu.memory_space<vmem>>, vector<128x1xf32>
    %5 = vector.broadcast %4 : vector<128x1xf32> to vector<128x128xf32>
    %6 = arith.addf %3, %5 : vector<128x128xf32>
    %cst_5 = arith.constant 0.000000e+00 : f32
    %7 = vector.broadcast %cst_5 : f32 to vector<128x128xf32>
    %8 = arith.maximumf %6, %7 : vector<128x128xf32>
    %c0_6 = arith.constant 0 : index
    %c0_7 = arith.constant 0 : index
    %9 = vector.load %arg4[%c0_6, %c0_7] : memref<128x128xbf16, #tpu.memory_space<vmem>>, vector<128x128xbf16>
    %10 = arith.truncf %8 : vector<128x128xf32> to vector<128x128xbf16>
    %cst_8 = arith.constant dense<0.000000e+00> : vector<128x128xf32>
    %11 = tpu.matmul %9, %10, %cst_8 {dimension_numbers = #tpu.dot_dimension_numbers<[1], [0], [0], [1], [0, 0, 1, 1], [], []>} : vector<128x128xbf16>, vector<128x128xbf16>, vector<128x128xf32> -> vector<128x128xf32>
    %c0_9 = arith.constant 0 : index
    %c0_10 = arith.constant 0 : index
    %12 = vector.load %arg5[%c0_9, %c0_10] : memref<128x1xf32, #tpu.memory_space<vmem>>, vector<128x1xf32>
    %13 = vector.broadcast %12 : vector<128x1xf32> to vector<128x128xf32>
    %14 = arith.addf %11, %13 : vector<128x128xf32>
    %cst_11 = arith.constant 0.000000e+00 : f32
    %15 = vector.broadcast %cst_11 : f32 to vector<128x128xf32>
    %16 = arith.maximumf %14, %15 : vector<128x128xf32>
    %c0_12 = arith.constant 0 : index
    %c0_13 = arith.constant 0 : index
    %17 = vector.load %arg6[%c0_12, %c0_13] : memref<1x128xbf16, #tpu.memory_space<vmem>>, vector<1x128xbf16>
    %18 = arith.truncf %16 : vector<128x128xf32> to vector<128x128xbf16>
    %cst_14 = arith.constant dense<0.000000e+00> : vector<1x128xf32>
    %19 = tpu.matmul %17, %18, %cst_14 {dimension_numbers = #tpu.dot_dimension_numbers<[1], [0], [0], [1], [0, 0, 1, 1], [], []>} : vector<1x128xbf16>, vector<128x128xbf16>, vector<1x128xf32> -> vector<1x128xf32>
    %c0_15 = arith.constant 0 : index
    %c0_16 = arith.constant 0 : index
    %20 = vector.load %arg7[%c0_15, %c0_16] : memref<1x1xf32, #tpu.memory_space<vmem>>, vector<1x1xf32>
    %21 = vector.broadcast %20 : vector<1x1xf32> to vector<1x128xf32>
    %22 = arith.addf %19, %21 : vector<1x128xf32>
    %23 = vector.shape_cast %22 : vector<1x128xf32> to vector<1x1x128xf32>
    %c0_17 = arith.constant 0 : index
    %c0_18 = arith.constant 0 : index
    %c0_19 = arith.constant 0 : index
    %24 = vector.load %arg8[%c0_17, %c0_18, %c0_19] : memref<1x1x128xf32, #tpu.memory_space<vmem>>, vector<1x1x128xf32>
    tpu.vector_store %arg8[%c0_17, %c0_18, %c0_19], %23 {strides = array<i32>} : memref<1x1x128xf32, #tpu.memory_space<vmem>>, vector<1x1x128xf32>,
    return
  }
  func.func @transform_0(%arg0: i32) -> (i32, i32) {
    %c0_i32 = arith.constant 0 : i32
    %c0_i32_0 = arith.constant 0 : i32
    return %c0_i32, %arg0 : i32, i32
  }
  func.func @transform_1(%arg0: i32) -> (i32, i32) {
    %c0_i32 = arith.constant 0 : i32
    %c0_i32_0 = arith.constant 0 : i32
    %c0_i32_1 = arith.constant 0 : i32
    return %c0_i32, %c0_i32_0 : i32, i32
  }
  func.func @transform_2(%arg0: i32) -> (i32, i32) {
    %c0_i32 = arith.constant 0 : i32
    %c0_i32_0 = arith.constant 0 : i32
    %c0_i32_1 = arith.constant 0 : i32
    return %c0_i32, %c0_i32_0 : i32, i32
  }
  func.func @transform_3(%arg0: i32) -> (i32, i32) {
    %c0_i32 = arith.constant 0 : i32
    %c0_i32_0 = arith.constant 0 : i32
    %c0_i32_1 = arith.constant 0 : i32
    return %c0_i32, %c0_i32_0 : i32, i32
  }
  func.func @transform_4(%arg0: i32) -> (i32, i32) {
    %c0_i32 = arith.constant 0 : i32
    %c0_i32_0 = arith.constant 0 : i32
    %c0_i32_1 = arith.constant 0 : i32
    return %c0_i32, %c0_i32_0 : i32, i32
  }
  func.func @transform_5(%arg0: i32) -> (i32, i32) {
    %c0_i32 = arith.constant 0 : i32
    %c0_i32_0 = arith.constant 0 : i32
    %c0_i32_1 = arith.constant 0 : i32
    return %c0_i32, %c0_i32_0 : i32, i32
  }
  func.func @transform_6(%arg0: i32) -> (i32, i32) {
    %c0_i32 = arith.constant 0 : i32
    %c0_i32_0 = arith.constant 0 : i32
    %c0_i32_1 = arith.constant 0 : i32
    return %c0_i32, %c0_i32_0 : i32, i32
  }
  func.func @transform_7(%arg0: i32) -> (i32, i32, i32) {
    %c0_i32 = arith.constant 0 : i32
    %c0_i32_0 = arith.constant 0 : i32
    %c0_i32_1 = arith.constant 0 : i32
    return %arg0, %c0_i32, %c0_i32_0 : i32, i32, i32
  }
}

</mosaic_0001>

<bundles_post_ra>
// kernel: critic_forward.1
= control target key start
LH: loop header
LB: loop body
LE: loop exit
PB: predicated region body
PF: predicated region fallthrough
CT: control target
= control target key end

     0   :  { %vm184_vm0 = vcmask 130048   ;;  %v816_v2 = vmov 0   ;;  %vm818_vm1 = vmmov 0   ;;  %s1053_s0 = inlined_call_operand.vmem [shape: f32[16,128], index: 0, kind: input, shape index: {}]   ;;  %s1054_s1 = inlined_call_operand.vmem [shape: bf16[128,16], index: 1, kind: input, shape index: {}]   ;;  %s1055_s6 = inlined_call_operand.<no memory space> [shape: f32[1,1], index: 6, kind: input, shape index: {}]   ;;  %s1056_s2 = inlined_call_operand.vmem [shape: f32[128,1], index: 2, kind: input, shape index: {}]   ;;  %s1057_s4 = inlined_call_operand.vmem [shape: f32[128,1], index: 4, kind: input, shape index: {}]   ;;  %s1058_s3 = inlined_call_operand.vmem [shape: bf16[128,128], index: 3, kind: input, shape index: {}]   ;;  %s1059_s5 = inlined_call_operand.vmem [shape: bf16[1,128], index: 5, kind: input, shape index: {}]   ;;  %s1060_s7 = inlined_call_operand.vmem [shape: f32[1,1,128], index: 7, kind: output, shape index: {}]  }
   0x1   :  { %v29_v0 = vld [vmem:[%s1053_s0] sm:$0xff]  ;;  %v30_v1 = vld [vmem:[%s1053_s0 + $0x8] sm:$0xff]  ;;  %798 = vset.pattern.permute.xlu0 %v816_v2  ;;  %799 = vset.pattern.permute.xlu1 %v816_v2  ;;  %v12_v3 = vstv %s1055_s6  ;;  %v802_v7 = vld [vmem:[%s1054_s1 + $0x10] sm:$0xff]  }
   0x2   :  { %v31_v4 = vpack.c.bf16 %v30_v1, %v29_v0  ;;  %v800_v5 = vld [vmem:[%s1054_s1] sm:$0xff]   ;;  %13 = vst [vmem:[#allocation2] sm:$0x1] %v12_v3  ;;  %v801_v6 = vld [vmem:[%s1054_s1 + $0x8] sm:$0xff]   ;;  %v62_v8 = vld [vmem:[%s1056_s2 + $0x70] sm:$0xff] }
   0x3   :  { %727 = vmatprep.mubr.msk.bf16.mxu0 %vm184_vm0, %v800_v5  ;;  %136 = vperm.xlu0 %798, %v62_v8   ;;  %v60_v9 = vld [vmem:[%s1056_s2 + $0x60] sm:$0xff]  ;;  %v63_v10 = vld [vmem:[%s1056_s2 + $0x78] sm:$0xff]  ;;  %v61_v12 = vld [vmem:[%s1056_s2 + $0x68] sm:$0xff] }
   0x4   :  { %725 = vmatprep.subr.bf16.mxu0 %v31_v4  ;;  %126 = vperm.xlu1 %799, %v60_v9   ;;  %v803_v11 = vld [vmem:[%s1054_s1 + $0x18] sm:$0xff]   ;;  %v804_v13 = vld [vmem:[%s1054_s1 + $0x20] sm:$0xff]   ;;  %v58_v14 = vld [vmem:[%s1056_s2 + $0x50] sm:$0xff] }
   0x5   :  { %726 = vmatpush3.bf16.msra.mxu0 %v31_v4  ;;  %v59_v15 = vld [vmem:[%s1056_s2 + $0x58] sm:$0xff]  ;;  %v56_v16 = vld [vmem:[%s1056_s2 + $0x40] sm:$0xff]  ;;  %v805_v17 = vld [vmem:[%s1054_s1 + $0x28] sm:$0xff]  }
   0x6   :  { %v57_v18 = vld [vmem:[%s1056_s2 + $0x48] sm:$0xff]  ;;  %v806_v19 = vld [vmem:[%s1054_s1 + $0x30] sm:$0xff]   ;;  %v55_v21 = vld [vmem:[%s1056_s2 + $0x38] sm:$0xff] }
   0x7   :  { %141 = vperm.xlu0 %798, %v63_v10   ;;  %v54_v20 = vld [vmem:[%s1056_s2 + $0x30] sm:$0xff]  ;;  %v52_v22 = vld [vmem:[%s1056_s2 + $0x20] sm:$0xff]  ;;  %v807_v23 = vld [vmem:[%s1054_s1 + $0x38] sm:$0xff]  }
   0x8   :  { %728 = vmatmul.mubr.msk.bf16.vlgmr.msra.gmra.mxu0 %vm184_vm0, %v801_v6  ;;  %131 = vperm.xlu1 %799, %v61_v12   ;;  %v53_v24 = vld [vmem:[%s1056_s2 + $0x28] sm:$0xff]  ;;  %v50_v25 = vld [vmem:[%s1056_s2 + $0x10] sm:$0xff]  ;;  %v51_v26 = vld [vmem:[%s1056_s2 + $0x18] sm:$0xff] }
   0x9   :  { %731 = vmatprep.mubr.msk.bf16.mxu0 %vm184_vm0, %v802_v7  ;;  %v48_v27 = vld [vmem:[%s1056_s2] sm:$0xff]  ;;  %v49_v28 = vld [vmem:[%s1056_s2 + $0x8] sm:$0xff]  ;;  %v360_v29 = vld [vmem:[%s1057_s4 + $0x70] sm:$0xff] }
   0xa   :  { %v361_v30 = vld [vmem:[%s1057_s4 + $0x78] sm:$0xff]  ;;  %v358_v31 = vld [vmem:[%s1057_s4 + $0x60] sm:$0xff]  ;;  %v359_v32 = vld [vmem:[%s1057_s4 + $0x68] sm:$0xff] }
   0xb   :  { %116 = vperm.xlu0 %798, %v58_v14   ;;  %v356_v33 = vld [vmem:[%s1057_s4 + $0x50] sm:$0xff]  ;;  %v357_v34 = vld [vmem:[%s1057_s4 + $0x58] sm:$0xff]  ;;  %v354_v35 = vld [vmem:[%s1057_s4 + $0x40] sm:$0xff] }
   0xc   :  { %121 = vperm.xlu1 %799, %v59_v15   ;;  %v355_v36 = vld [vmem:[%s1057_s4 + $0x48] sm:$0xff]  ;;  %v352_v37 = vld [vmem:[%s1057_s4 + $0x30] sm:$0xff]  ;;  %v353_v38 = vld [vmem:[%s1057_s4 + $0x38] sm:$0xff] }
   0xd   :  { %v350_v39 = vld [vmem:[%s1057_s4 + $0x20] sm:$0xff]  ;;  %v351_v40 = vld [vmem:[%s1057_s4 + $0x28] sm:$0xff]  ;;  %v348_v41 = vld [vmem:[%s1057_s4 + $0x10] sm:$0xff] }
   0xe   :  { %v349_v42 = vld [vmem:[%s1057_s4 + $0x18] sm:$0xff]  ;;  %v346_v43 = vld [vmem:[%s1057_s4] sm:$0xff]  ;;  %v347_v44 = vld [vmem:[%s1057_s4 + $0x8] sm:$0xff] }
   0xf   :  { %106 = vperm.xlu0 %798, %v56_v16   ;;  %v612_v45 = vld [vmem:[#allocation2] sm:$0x1] }
  0x10   :  { %732 = vmatmul.mubr.msk.bf16.gmra.mxu0 %vm184_vm0, %v803_v11  ;;  %111 = vperm.xlu1 %799, %v57_v18   ;;  %v808_v46 = vld [vmem:[%s1058_s3] sm:$0xff]  }
  0x11   :  { %735 = vmatprep.mubr.msk.bf16.mxu0 %vm184_vm0, %v804_v13  ;;  %759 = vmatprep.mubr.bf16.mxu1 %v808_v46 }
  0x13   :  { %96 = vperm.xlu0 %798, %v54_v20  }
  0x14   :  { %101 = vperm.xlu1 %799, %v55_v21  }
  0x17   :  { %86 = vperm.xlu0 %798, %v52_v22  }
  0x18   :  { %736 = vmatmul.mubr.msk.bf16.gmra.mxu0 %vm184_vm0, %v805_v17  ;;  %91 = vperm.xlu1 %799, %v53_v24  }
  0x19   :  { %739 = vmatprep.mubr.msk.bf16.mxu0 %vm184_vm0, %v806_v19 }
  0x1b   :  { %76 = vperm.xlu0 %798, %v50_v25  }
  0x1c   :  { %81 = vperm.xlu1 %799, %v51_v26  }
  0x1f   :  { %66 = vperm.xlu0 %798, %v48_v27  }
  0x20   :  { %740 = vmatmul.mubr.msk.bf16.gmra.mxu0 %vm184_vm0, %v807_v23  ;;  %71 = vperm.xlu1 %799, %v49_v28  }
  0x23   :  { %434 = vperm.xlu0 %798, %v360_v29  }
  0x24   :  { %439 = vperm.xlu1 %799, %v361_v30  }
  0x27   :  { %424 = vperm.xlu0 %798, %v358_v31  }
  0x28   :  { %429 = vperm.xlu1 %799, %v359_v32  }
  0x2b   :  { %414 = vperm.xlu0 %798, %v356_v33  }
  0x2c   :  { %419 = vperm.xlu1 %799, %v357_v34  }
  0x2f   :  { %404 = vperm.xlu0 %798, %v354_v35  }
  0x30   :  { %409 = vperm.xlu1 %799, %v355_v36  }
  0x33   :  { %394 = vperm.xlu0 %798, %v352_v37  }
  0x34   :  { %399 = vperm.xlu1 %799, %v353_v38  }
  0x37   :  { %384 = vperm.xlu0 %798, %v350_v39  }
  0x38   :  { %389 = vperm.xlu1 %799, %v351_v40  }
  0x3b   :  { %374 = vperm.xlu0 %798, %v348_v41  }
  0x3c   :  { %379 = vperm.xlu1 %799, %v349_v42  }
  0x3f   :  { %364 = vperm.xlu0 %798, %v346_v43  }
  0x40   :  { %369 = vperm.xlu1 %799, %v347_v44  }
  0x43   :  { %615 = vperm.xlu0 %798, %v612_v45  }
  0x7e   :  { %v137_v53 = vpop.permute.xlu0 %136 }
  0x7f   :  { %v127_v51 = vpop.permute.xlu1 %126 }
  0x82   :  { %v142_v58 = vpop.permute.xlu0 %141 }
  0x83   :  { %v132_v56 = vpop.permute.xlu1 %131 }
  0x86   :  { %v117_v63 = vpop.permute.xlu0 %116 }
  0x87   :  { %v122_v61 = vpop.permute.xlu1 %121 }
  0x8a   :  { %v107_v5 = vpop.permute.xlu0 %106 }
  0x8b   :  { %v112_v2 = vpop.permute.xlu1 %111 }
  0x8e   :  { %v97_v19 = vpop.permute.xlu0 %96 }
  0x8f   :  { %v102_v14 = vpop.permute.xlu1 %101 }
  0x92   :  { %v87_v29 = vpop.permute.xlu0 %86 }
  0x93   :  { %v92_v25 = vpop.permute.xlu1 %91 }
  0x96   :  { %v77_v38 = vpop.permute.xlu0 %76 }
  0x97   :  { %v82_v35 = vpop.permute.xlu1 %81 }
  0x9b   :  { %v72_v44 = vpop.permute.xlu1 %71 }
  0xc8   :  { %v999_v47 = vpop.f32.mrf.mxu0 }
  0xc9   :  { %v252_v42 = vadd.f32 %v999_v47, %v77_v38  ;;  %v809_v47 = vld [vmem:[%s1058_s3 + $0x8] sm:$0xff]  }
  0xca   :  { %v1001_v48 = vpop.f32.mrf.mxu0 }
  0xcc   :  { %v730_v49 = vpop.f32.mrf.mxu0 }
  0xcd   :  { %v255_v39 = vadd.f32 %v730_v49, %v82_v35 }
  0xce   :  { %v1003_v50 = vpop.f32.mrf.mxu0 }
  0xcf   :  { %v309_v45 = vmax.f32 %v255_v39, 0.0  ;;  %v247_v46 = vadd.f32 %v1003_v50, %v72_v44  ;;  %v810_v50 = vld [vmem:[%s1058_s3 + $0x10] sm:$0xff]  }
  0xd0   :  { %v733_v52 = vpop.f32.mrf.mxu0 }
  0xd1   :  { %v268_v30 = vadd.f32 %v733_v52, %v97_v19  ;;  %v67_v52 = vpop.permute.xlu0 %66  ;;  %v307_v49 = vmax.f32 %v247_v46, 0.0 }
  0xd2   :  { %v259_v54 = vpop.f32.mrf.mxu0 }
  0xd3   :  { %v312_v36 = vmax.f32 %v268_v30, 0.0  ;;  %v260_v37 = vadd.f32 %v259_v54, %v87_v29  ;;  %v244_v54 = vadd.f32 %v1001_v48, %v67_v52  ;;  %v811_v48 = vld [vmem:[%s1058_s3 + $0x18] sm:$0xff]  }
  0xd4   :  { %v734_v55 = vpop.f32.mrf.mxu0 }
  0xd5   :  { %v271_v26 = vadd.f32 %v734_v55, %v102_v14  ;;  %v310_v43 = vmax.f32 %v260_v37, 0.0 }
  0xd6   :  { %v262_v57 = vpop.f32.mrf.mxu0 }
  0xd7   :  { %v313_v32 = vmax.f32 %v271_v26, 0.0  ;;  %v263_v33 = vadd.f32 %v262_v57, %v92_v25 }
  0xd8   :  { %v737_v59 = vpop.f32.mrf.mxu0 }
  0xd9   :  { %v284_v15 = vadd.f32 %v737_v59, %v117_v63  ;;  %v341_v40 = vpack.c.bf16 %v313_v32, %v312_v36  ;;  %v311_v41 = vmax.f32 %v263_v33, 0.0  ;;  %v813_v59 = vld [vmem:[%s1058_s3 + $0x28] sm:$0xff]  }
  0xda   :  { %v275_v60 = vpop.f32.mrf.mxu0 }
  0xdb   :  { %v316_v23 = vmax.f32 %v284_v15, 0.0  ;;  %v276_v24 = vadd.f32 %v275_v60, %v107_v5  ;;  %v814_v60 = vld [vmem:[%s1058_s3 + $0x30] sm:$0xff]  }
  0xdc   :  { %v738_v62 = vpop.f32.mrf.mxu0 }
  0xdd   :  { %v287_v10 = vadd.f32 %v738_v62, %v122_v61  ;;  %v314_v31 = vmax.f32 %v276_v24, 0.0  ;;  %v815_v61 = vld [vmem:[%s1058_s3 + $0x38] sm:$0xff]   ;;  %v817_v62 = vmov 0.0  }
  0xde   :  { %v278_v0 = vpop.f32.mrf.mxu0  ;;  %775 = vmatprep.subr.bf16.mxu0 %v817_v62  ;;  %791 = vmatprep.mubr.msk.bf16.mxu0 %vm818_vm1, %v817_v62 }
  0xdf   :  { %v317_v20 = vmax.f32 %v287_v10, 0.0  ;;  %v279_v21 = vadd.f32 %v278_v0, %v112_v2 }
  0xe0   :  { %v741_v1 = vpop.f32.mrf.mxu0 }
  0xe1   :  { %v300_v4 = vadd.f32 %v741_v1, %v137_v53  ;;  %v343_v27 = vpack.c.bf16 %v317_v20, %v316_v23  ;;  %v315_v28 = vmax.f32 %v279_v21, 0.0  ;;  %v308_v53 = vmax.f32 %v252_v42, 0.0 }
  0xe2   :  { %v291_v3 = vpop.f32.mrf.mxu0 }
  0xe3   :  { %v292_v7 = vadd.f32 %v291_v3, %v127_v51  ;;  %v320_v11 = vmax.f32 %v300_v4, 0.0  ;;  %v342_v34 = vpack.c.bf16 %v315_v28, %v314_v31  ;;  %v340_v51 = vpack.c.bf16 %v311_v41, %v310_v43  ;;  %v440_v4 = vpop.permute.xlu1 %439 }
  0xe4   :  { %v742_v6 = vpop.f32.mrf.mxu0  ;;  %v339_v55 = vpack.c.bf16 %v309_v45, %v308_v53 }
  0xe5   :  { %v303_v8 = vadd.f32 %v742_v6, %v142_v58  ;;  %v318_v16 = vmax.f32 %v292_v7, 0.0  ;;  %v812_v58 = vld [vmem:[%s1058_s3 + $0x20] sm:$0xff]   ;;  %v435_v6 = vpop.permute.xlu0 %434 }
  0xe6   :  { %v294_v9 = vpop.f32.mrf.mxu0 }
  0xe7   :  { %v321_v12 = vmax.f32 %v303_v8, 0.0  ;;  %v295_v13 = vadd.f32 %v294_v9, %v132_v56  ;;  %v306_v56 = vmax.f32 %v244_v54, 0.0  ;;  %v430_v9 = vpop.permute.xlu1 %429 }
  0xe9   :  { %v319_v17 = vmax.f32 %v295_v13, 0.0  ;;  %v345_v18 = vpack.c.bf16 %v321_v12, %v320_v11  ;;  %v338_v57 = vpack.c.bf16 %v307_v49, %v306_v56  ;;  %v425_v11 = vpop.permute.xlu0 %424 }
  0xeb   :  { %v344_v22 = vpack.c.bf16 %v319_v17, %v318_v16  ;;  %743 = vmatprep.subr.bf16.mxu1 %v345_v18  ;;  %v420_v14 = vpop.permute.xlu1 %419 }
  0xec   :  { %744 = vmatpush3.bf16.msra.mxu1 %v345_v18 }
  0xed   :  { %745 = vmatprep.subr.bf16.mxu1 %v344_v22  ;;  %v415_v16 = vpop.permute.xlu0 %414 }
  0xef   :  { %v410_v20 = vpop.permute.xlu1 %409 }
  0xf0   :  { %746 = vmatpush3.bf16.msra.mxu1 %v344_v22 }
  0xf1   :  { %747 = vmatprep.subr.bf16.mxu1 %v343_v27  ;;  %v405_v23 = vpop.permute.xlu0 %404 }
  0xf3   :  { %v400_v32 = vpop.permute.xlu1 %399 }
  0xf4   :  { %748 = vmatpush3.bf16.msra.mxu1 %v343_v27 }
  0xf5   :  { %749 = vmatprep.subr.bf16.mxu1 %v342_v34  ;;  %v395_v35 = vpop.permute.xlu0 %394 }
  0xf7   :  { %v390_v41 = vpop.permute.xlu1 %389 }
  0xf8   :  { %750 = vmatpush3.bf16.msra.mxu1 %v342_v34 }
  0xf9   :  { %751 = vmatprep.subr.bf16.mxu1 %v341_v40  ;;  %v385_v45 = vpop.permute.xlu0 %384 }
  0xfc   :  { %752 = vmatpush3.bf16.msra.mxu1 %v341_v40 }
  0xfd   :  { %753 = vmatprep.subr.bf16.mxu1 %v340_v51 }
 0x100   :  { %754 = vmatpush3.bf16.msra.mxu1 %v340_v51 }
 0x101   :  { %755 = vmatprep.subr.bf16.mxu1 %v339_v55 }
 0x104   :  { %756 = vmatpush3.bf16.msra.mxu1 %v339_v55  ;;  %v380_v55 = vpop.permute.xlu1 %379 }
 0x105   :  { %757 = vmatprep.subr.bf16.mxu1 %v338_v57 }
 0x108   :  { %758 = vmatpush3.bf16.msra.mxu1 %v338_v57  ;;  %v375_v57 = vpop.permute.xlu0 %374 }
 0x10b   :  { %760 = vmatmul.mubr.bf16.vlgmr.msra.gmra.mxu1 %v809_v47 }
 0x10c   :  { %763 = vmatprep.mubr.bf16.mxu1 %v810_v50 }
 0x113   :  { %764 = vmatmul.mubr.bf16.gmra.mxu1 %v811_v48 }
 0x114   :  { %767 = vmatprep.mubr.bf16.mxu1 %v812_v58 }
 0x11b   :  { %768 = vmatmul.mubr.bf16.gmra.mxu1 %v813_v59 }
 0x11c   :  { %771 = vmatprep.mubr.bf16.mxu1 %v814_v60  ;;  %v370_v60 = vpop.permute.xlu1 %369 }
 0x123   :  { %772 = vmatmul.mubr.bf16.gmra.mxu1 %v815_v61 }
 0x1cb   :  { %v1031_v63 = vpop.f32.mrf.mxu1 }
 0x1cc   :  { %v533_v58 = vadd.f32 %v1031_v63, %v375_v57 }
 0x1cd   :  { %v1033_v0 = vpop.f32.mrf.mxu1 }
 0x1cf   :  { %v762_v1 = vpop.f32.mrf.mxu1 }
 0x1d0   :  { %v536_v47 = vadd.f32 %v762_v1, %v380_v55 }
 0x1d1   :  { %v1035_v2 = vpop.f32.mrf.mxu1 }
 0x1d2   :  { %v590_v61 = vmax.f32 %v536_v47, 0.0 }
 0x1d3   :  { %v765_v3 = vpop.f32.mrf.mxu1 }
 0x1d4   :  { %v549_v46 = vadd.f32 %v765_v3, %v395_v35  ;;  %v528_v3 = vadd.f32 %v1035_v2, %v370_v60  ;;  %v603_v2 = vld [vmem:[%s1059_s5] sm:$0x1] }
 0x1d5   :  { %v540_v5 = vpop.f32.mrf.mxu1 }
 0x1d6   :  { %v593_v49 = vmax.f32 %v549_v46, 0.0  ;;  %v541_v56 = vadd.f32 %v540_v5, %v385_v45  ;;  %v589_v5 = vmax.f32 %v533_v58, 0.0 }
 0x1d7   :  { %v766_v7 = vpop.f32.mrf.mxu1 }
 0x1d8   :  { %v552_v42 = vadd.f32 %v766_v7, %v400_v32  ;;  %v591_v59 = vmax.f32 %v541_v56, 0.0  ;;  %v605_v1 = vpack.c.bf16 %v590_v61, %v589_v5 }
 0x1d9   :  { %v543_v8 = vpop.f32.mrf.mxu1 }
 0x1da   :  { %v594_v52 = vmax.f32 %v552_v42, 0.0  ;;  %v544_v53 = vadd.f32 %v543_v8, %v390_v41  ;;  %v588_v8 = vmax.f32 %v528_v3, 0.0 }
 0x1db   :  { %v769_v10 = vpop.f32.mrf.mxu1 }
 0x1dc   :  { %v565_v33 = vadd.f32 %v769_v10, %v415_v16  ;;  %v607_v50 = vpack.c.bf16 %v594_v52, %v593_v49  ;;  %v592_v48 = vmax.f32 %v544_v53, 0.0  ;;  %v618_v10 = vlaneseq }
 0x1dd   :  { %v556_v12 = vpop.f32.mrf.mxu1 }
 0x1de   :  { %v597_v39 = vmax.f32 %v565_v33, 0.0  ;;  %v557_v40 = vadd.f32 %v556_v12, %v405_v23 }
 0x1df   :  { %v770_v13 = vpop.f32.mrf.mxu1 }
 0x1e0   :  { %v568_v29 = vadd.f32 %v770_v13, %v420_v14  ;;  %v595_v51 = vmax.f32 %v557_v40, 0.0 }
 0x1e1   :  { %v559_v15 = vpop.f32.mrf.mxu1 }
 0x1e2   :  { %v598_v36 = vmax.f32 %v568_v29, 0.0  ;;  %v560_v37 = vadd.f32 %v559_v15, %v410_v20 }
 0x1e3   :  { %v773_v17 = vpop.f32.mrf.mxu1 }
 0x1e4   :  { %v581_v19 = vadd.f32 %v773_v17, %v435_v6  ;;  %v609_v43 = vpack.c.bf16 %v598_v36, %v597_v39  ;;  %v596_v44 = vmax.f32 %v560_v37, 0.0  ;;  %v365_v6 = vpop.permute.xlu0 %364 }
 0x1e5   :  { %v572_v18 = vpop.f32.mrf.mxu1  ;;  %v525_v7 = vadd.f32 %v1033_v0, %v365_v6 }
 0x1e6   :  { %v601_v25 = vmax.f32 %v581_v19, 0.0  ;;  %v573_v26 = vadd.f32 %v572_v18, %v425_v11  ;;  %v608_v54 = vpack.c.bf16 %v596_v44, %v595_v51  ;;  %v619_v11 = vshrl.u32 %v618_v10, 7 }
 0x1e7   :  { %v774_v21 = vpop.f32.mrf.mxu1 }
 0x1e8   :  { %v584_v22 = vadd.f32 %v774_v21, %v440_v4  ;;  %v599_v34 = vmax.f32 %v573_v26, 0.0  ;;  %v606_v4 = vpack.c.bf16 %v592_v48, %v591_v59  ;;  %v620_v12 = vsub.s32 0, %v619_v11  ;;  %v616_v0 = vpop.permute.xlu0 %615 }
 0x1e9   :  { %v575_v24 = vpop.f32.mrf.mxu1 }
 0x1ea   :  { %v602_v27 = vmax.f32 %v584_v22, 0.0  ;;  %v576_v28 = vadd.f32 %v575_v24, %v430_v9  ;;  %v587_v9 = vmax.f32 %v525_v7, 0.0  ;;  %v621_v13 = vrot.slane %v616_v0, %v620_v12 }
 0x1ec   :  { %v611_v30 = vpack.c.bf16 %v602_v27, %v601_v25  ;;  %v600_v31 = vmax.f32 %v576_v28, 0.0  ;;  %v604_v63 = vpack.c.bf16 %v588_v8, %v587_v9 }
 0x1ee   :  { %776 = vmatpush3.bf16.msra.mxu0 %v611_v30  ;;  %v610_v38 = vpack.c.bf16 %v600_v31, %v599_v34 }
 0x1ef   :  { %777 = vmatprep.subr.bf16.mxu0 %v817_v62 }
 0x1f2   :  { %778 = vmatpush3.bf16.msra.mxu0 %v610_v38 }
 0x1f3   :  { %779 = vmatprep.subr.bf16.mxu0 %v817_v62 }
 0x1f6   :  { %780 = vmatpush3.bf16.msra.mxu0 %v609_v43 }
 0x1f7   :  { %781 = vmatprep.subr.bf16.mxu0 %v817_v62 }
 0x1fa   :  { %782 = vmatpush3.bf16.msra.mxu0 %v608_v54 }
 0x1fb   :  { %783 = vmatprep.subr.bf16.mxu0 %v817_v62 }
 0x1fe   :  { %784 = vmatpush3.bf16.msra.mxu0 %v607_v50 }
 0x1ff   :  { %785 = vmatprep.subr.bf16.mxu0 %v817_v62 }
 0x202   :  { %786 = vmatpush3.bf16.msra.mxu0 %v606_v4 }
 0x203   :  { %787 = vmatprep.subr.bf16.mxu0 %v817_v62 }
 0x206   :  { %788 = vmatpush3.bf16.msra.mxu0 %v605_v1 }
 0x207   :  { %789 = vmatprep.subr.bf16.mxu0 %v817_v62 }
 0x20a   :  { %790 = vmatpush3.bf16.msra.mxu0 %v604_v63 }
 0x20d   :  { %792 = vmatmul.mubr.bf16.vlgmr.msra.gmra.mxu0 %v603_v2 }
 0x2cd   :  { %v656_v14 = vpop.f32.mrf.mxu0 }
 0x2ce   :  { %v657_v15 = vadd.f32 %v656_v14, %v621_v13 }
 0x2cf   :  { %v793_v16 = vpop.f32.mrf.mxu0 }
 0x2d0   :  { %662 = vst [vmem:[%s1060_s7] sm:$0x1] %v657_v15 }
 0x2d1   :  { %v659_v62 = vpop.f32.mrf.mxu0 }
 0x2d3   :  { %v794_v17 = vpop.f32.mrf.mxu0 }

</bundles_post_ra>
